<compile_context>
chip_gen: v5e
topology: v5e:2x2
jax: 0.10.0
libtpu: 0.0.40
codegen_flags: <defaults>
</compile_context>

<pallas_src>
import functools
import math

import jax
import jax.numpy as jnp
from jax.experimental import pallas as pl
from jax.experimental.pallas import tpu as pltpu


def mha_kernel(q_ref, k_ref, v_ref, bias_ref,
               wq_ref, bq_ref, wk_ref, bk_ref, wv_ref, bv_ref,
               wo_ref, bo_ref, out_ref, acc_ref,
               *, group_size, d_k, compute_dtype, approx_recip):
    gi = pl.program_id(1)
    n_g = pl.num_programs(1)
    cd = compute_dtype

    # Activations are already in compute_dtype (cast once in the wrapper).
    q = q_ref[0]                              # (S, D)
    k = k_ref[0]
    v = v_ref[0]

    # Constant-index weight stacks: select this group's slab by leading-axis index.
    wq = wq_ref[gi]                           # (D, G*d_k)
    wk = wk_ref[gi]
    wv = wv_ref[gi]

    # Fused wide-N projections for all G heads of this group (N = G*d_k).
    # 1/sqrt(d_k) is folded into wq / bq at pack time; accumulation is f32.
    qh = (jnp.dot(q, wq, preferred_element_type=jnp.float32) + bq_ref[gi]).astype(cd)
    kh = (jnp.dot(k, wk, preferred_element_type=jnp.float32) + bk_ref[gi]).astype(cd)
    vh = (jnp.dot(v, wv, preferred_element_type=jnp.float32) + bv_ref[gi]).astype(cd)

    bias = bias_ref[0].astype(jnp.float32)    # additive mask: 0 keep / -1e9 masked

    # Static per-head loop within the group: all lane slices have static offsets.
    ctx_parts = []
    for j in range(group_size):
        sl = slice(j * d_k, (j + 1) * d_k)
        # scores: contract the last dims (no materialized kh.T).
        s = jax.lax.dot_general(qh[:, sl], kh[:, sl], (((1,), (1,)), ((), ())),
                                preferred_element_type=jnp.float32)
        s = s + bias
        # Numerically-stabilized softmax; normalization deferred to after PV.
        s = s - jnp.max(s, axis=-1, keepdims=True)
        e = jnp.exp(s)
        # TODO(synk): on v6e/v7x the exp could run in bf16 to double EUP
        # throughput at long S; kept f32 here to stay chip-agnostic (v5e).
        inv_l = pl.reciprocal(jnp.sum(e, axis=-1, keepdims=True), approx=approx_recip)
        ctx = jnp.dot(e.astype(cd), vh[:, sl],
                      preferred_element_type=jnp.float32) * inv_l       # (S, d_k)
        ctx_parts.append(ctx.astype(cd))
        # TODO(synk): attention-prob dropout omitted (eval / p = 0 behaviour).

    ctx_g = ctx_parts[0] if group_size == 1 else jnp.concatenate(ctx_parts, axis=-1)

    # Output projection for this group's rows of Wo^T (K = G*d_k), accumulated
    # across groups in a f32 VMEM scratch.
    contrib = jnp.dot(ctx_g, wo_ref[gi], preferred_element_type=jnp.float32)  # (S, D)

    @pl.when(gi == 0)
    def _init():
        acc_ref[...] = jnp.zeros_like(acc_ref)

    acc_ref[...] += contrib

    @pl.when(gi == n_g - 1)
    def _finalize():
        out_ref[0] = (acc_ref[...] + bo_ref[...]).astype(out_ref.dtype)


def _pick_group_size(h, d_k, d_model, target_n=512):
    """Smallest divisor G of h with G*d_k >= min(d_model, target_n)."""
    want = min(d_model, target_n)
    for g in range(1, h + 1):
        if h % g == 0 and g * d_k >= want:
            return g
    return h


def multi_head_attention(q, k, v, mask, params, h, *,
                         compute_dtype=jnp.bfloat16, approx_recip=None,
                         group_size=None):
    """q, k, v: (B, S, D); mask: (B, S, S) int (1=keep, 0=mask); torch-style params."""
    B, S, D = q.shape
    assert D % h == 0
    d_k = D // h
    wq, bq, wk, bk, wv, bv, wo, bo = params

    if approx_recip is None:
        approx_recip = compute_dtype != jnp.float32
    if group_size is None:
        group_size = _pick_group_size(h, d_k, D)
    assert h % group_size == 0
    n_g = h // group_size
    gd = group_size * d_k

    out_dtype = q.dtype
    cd = compute_dtype
    inv_sqrt_dk = 1.0 / math.sqrt(d_k)

    # torch (out, in) -> x @ W.T; pack per-group column slabs of W^T: (n_g, D, G*d_k).
    def pack_in_w(w, scale=1.0):
        return (jnp.asarray(w).T * scale).reshape(D, n_g, gd).transpose(1, 0, 2).astype(cd)

    def pack_in_b(b, scale=1.0):
        return (jnp.asarray(b) * scale).reshape(n_g, 1, gd).astype(jnp.float32)

    wq_s = pack_in_w(wq, inv_sqrt_dk)          # 1/sqrt(d_k) folded into the q path
    bq_s = pack_in_b(bq, inv_sqrt_dk)
    wk_s, bk_s = pack_in_w(wk), pack_in_b(bk)
    wv_s, bv_s = pack_in_w(wv), pack_in_b(bv)
    wo_s = jnp.asarray(wo).T.reshape(n_g, gd, D).astype(cd)   # per-group rows of Wo^T
    bo2 = jnp.asarray(bo).reshape(1, D).astype(jnp.float32)

    # Additive mask bias computed once and streamed in compute_dtype (halves HBM
    # on the bf16 path).  NOTE: differs from masked_fill only for fully-masked rows.
    bias = jnp.where(mask == 0, -1e9, 0.0).astype(cd)

    # Cast activations once in the wrapper (not per grid step in the kernel).
    q = q.astype(cd)
    k = k.astype(cd)
    v = v.astype(cd)

    ab = jnp.dtype(cd).itemsize
    ob = jnp.dtype(out_dtype).itemsize

    # Resident-set estimate for the scoped VMEM limit.
    est = (2 * 3 * S * D * ab            # q, k, v blocks (double-buffered)
           + 2 * S * S * ab              # mask-bias block
           + 2 * S * D * ob              # output block
           + 2 * 4 * D * D * ab          # resident weight stacks
           + S * D * 4                   # f32 accumulator scratch
           + 3 * S * gd * (4 + ab)       # group projections (f32 + cd copy)
           + 3 * S * S * 4               # live score / exp temporaries
           + S * D * (4 + ab))           # contrib + ctx_g
    vmem_limit = min(max(int(est * 1.25) + (1 << 20), 32 * 1024 * 1024),
                     100 * 1024 * 1024)

    kernel = functools.partial(
        mha_kernel, group_size=group_size, d_k=d_k,
        compute_dtype=cd, approx_recip=approx_recip)

    batched = lambda shape: pl.BlockSpec(shape, lambda b, gi: (b, 0, 0))
    const3 = lambda shape: pl.BlockSpec(shape, lambda b, gi: (0, 0, 0))

    cost = pl.CostEstimate(
        flops=int(2 * B * (4 * S * D * D + 2 * h * S * S * d_k)),
        transcendentals=int(B * h * S * S),
        bytes_accessed=int(B * S * (3 * D + S) * ab + B * S * D * ob
                           + 4 * D * D * ab + 4 * D * 4),
    )

    return pl.pallas_call(
        kernel,
        out_shape=jax.ShapeDtypeStruct((B, S, D), out_dtype),
        grid=(B, n_g),
        in_specs=[
            batched((1, S, D)),                          # q
            batched((1, S, D)),                          # k
            batched((1, S, D)),                          # v
            batched((1, S, S)),                          # additive mask bias
            const3((n_g, D, gd)),                        # Wq^T group stack (scaled)
            const3((n_g, 1, gd)),                        # bq (scaled)
            const3((n_g, D, gd)),                        # Wk^T
            const3((n_g, 1, gd)),                        # bk
            const3((n_g, D, gd)),                        # Wv^T
            const3((n_g, 1, gd)),                        # bv
            const3((n_g, gd, D)),                        # Wo^T group rows
            pl.BlockSpec((1, D), lambda b, gi: (0, 0)),  # bo
        ],
        out_specs=batched((1, S, D)),
        scratch_shapes=[pltpu.VMEM((S, D), jnp.float32)],
        compiler_params=pltpu.CompilerParams(
            dimension_semantics=("parallel", "arbitrary"),
            vmem_limit_bytes=vmem_limit),
        cost_estimate=cost,
    )(q, k, v, bias, wq_s, bq_s, wk_s, bk_s, wv_s, bv_s, wo_s, bo2)


def mha_reference(q, k, v, mask, params, h):
    """Pure-JAX f32 reference mirroring the PyTorch forward (dropout = identity)."""
    B, S, D = q.shape
    d_k = D // h
    wq, bq, wk, bk, wv, bv, wo, bo = params

    def lin(x, w, b):
        return x @ w.T + b

    def split(x):
        return x.reshape(B, S, h, d_k).transpose(0, 2, 1, 3)   # (B, h, S, d_k)

    qh, kh, vh = split(lin(q, wq, bq)), split(lin(k, wk, bk)), split(lin(v, wv, bv))
    scores = jnp.einsum('bhqd,bhkd->bhqk', qh, kh) / math.sqrt(d_k)
    scores = jnp.where(mask[:, None, :, :] == 0, -1e9, scores)
    attn = jax.nn.softmax(scores, axis=-1)
    ctx = jnp.einsum('bhqk,bhkd->bhqd', attn, vh)
    ctx = ctx.transpose(0, 2, 1, 3).reshape(B, S, D)
    return lin(ctx, wo, bo)


if __name__ == "__main__":
    B, S, d_model, h = 2, 8, 32, 4

    key = jax.random.PRNGKey(0)
    ks = jax.random.split(key, 12)

    scale = 1.0 / math.sqrt(d_model)
    wq = jax.random.normal(ks[0], (d_model, d_model), jnp.float32) * scale
    bq = jax.random.normal(ks[1], (d_model,), jnp.float32) * scale
    wk = jax.random.normal(ks[2], (d_model, d_model), jnp.float32) * scale
    bk = jax.random.normal(ks[3], (d_model,), jnp.float32) * scale
    wv = jax.random.normal(ks[4], (d_model, d_model), jnp.float32) * scale
    bv = jax.random.normal(ks[5], (d_model,), jnp.float32) * scale
    wo = jax.random.normal(ks[6], (d_model, d_model), jnp.float32) * scale
    bo = jax.random.normal(ks[7], (d_model,), jnp.float32) * scale
    params = (wq, bq, wk, bk, wv, bv, wo, bo)

    q = jax.random.normal(ks[8], (B, S, d_model), jnp.float32)
    k = jax.random.normal(ks[9], (B, S, d_model), jnp.float32)
    v = jax.random.normal(ks[10], (B, S, d_model), jnp.float32)
    # causal mask, 1 = keep, 0 = mask out
    mask = jnp.broadcast_to(jnp.tril(jnp.ones((S, S), jnp.int32)), (B, S, S))

    ref = mha_reference(q, k, v, mask, params, h)

    # f32-operand path: tight correctness check against the reference.
    out_f32 = multi_head_attention(q, k, v, mask, params, h,
                                   compute_dtype=jnp.float32)
    out_f32 = jax.block_until_ready(out_f32)
    assert out_f32.shape == (B, S, d_model)
    assert jnp.allclose(out_f32, ref, rtol=1e-4, atol=1e-4), "f32 kernel mismatch vs reference"

    # bf16-operand / f32-accumulate MXU fast path: loose numerical sanity check.
    out_bf16 = multi_head_attention(q, k, v, mask, params, h,
                                    compute_dtype=jnp.bfloat16)
    out_bf16 = jax.block_until_ready(out_bf16)
    assert out_bf16.shape == (B, S, d_model)
    assert jnp.allclose(out_bf16, ref, rtol=1e-1, atol=1e-1), "bf16 kernel too far from reference"

    # Also exercise the multi-group path (G=1 -> n_groups=h) for the accumulate logic.
    out_g1 = multi_head_attention(q, k, v, mask, params, h,
                                  compute_dtype=jnp.float32, group_size=1)
    out_g1 = jax.block_until_ready(out_g1)
    assert jnp.allclose(out_g1, ref, rtol=1e-4, atol=1e-4), "grouped kernel mismatch vs reference"

    print("KERNEL_OK")
</pallas_src>

<mosaic_0001>
module attributes {stable_mosaic.version = 11 : i64} {
  func.func @mha_kernel(%arg0: i32, %arg1: i32, %arg2: memref<1x8x32xf32, #tpu.memory_space<vmem>>, %arg3: memref<1x8x32xf32, #tpu.memory_space<vmem>>, %arg4: memref<1x8x32xf32, #tpu.memory_space<vmem>>, %arg5: memref<1x8x8xf32, #tpu.memory_space<vmem>>, %arg6: memref<1x32x32xf32, #tpu.memory_space<vmem>>, %arg7: memref<1x1x32xf32, #tpu.memory_space<vmem>>, %arg8: memref<1x32x32xf32, #tpu.memory_space<vmem>>, %arg9: memref<1x1x32xf32, #tpu.memory_space<vmem>>, %arg10: memref<1x32x32xf32, #tpu.memory_space<vmem>>, %arg11: memref<1x1x32xf32, #tpu.memory_space<vmem>>, %arg12: memref<1x32x32xf32, #tpu.memory_space<vmem>>, %arg13: memref<1x32xf32, #tpu.memory_space<vmem>>, %arg14: memref<1x8x32xf32, #tpu.memory_space<vmem>>, %arg15: memref<8x32xf32, #tpu.memory_space<vmem>>) attributes {dimension_semantics = [#tpu.dimension_semantics<parallel>, #tpu.dimension_semantics<arbitrary>], iteration_bounds = array<i64: 2, 1>, scalar_prefetch = 0 : i64, scratch_operands = 1 : i64, tpu.core_type = #tpu.core_type<tc>, window_params = [{transform_indices = @transform_0, window_bounds = array<i64: 1, 8, 32>}, {transform_indices = @transform_1, window_bounds = array<i64: 1, 8, 32>}, {transform_indices = @transform_2, window_bounds = array<i64: 1, 8, 32>}, {transform_indices = @transform_3, window_bounds = array<i64: 1, 8, 8>}, {pipeline_mode = #tpu.pipeline_mode<synchronous>, transform_indices = @transform_4, window_bounds = array<i64: 1, 32, 32>}, {pipeline_mode = #tpu.pipeline_mode<synchronous>, transform_indices = @transform_5, window_bounds = array<i64: 1, 1, 32>}, {pipeline_mode = #tpu.pipeline_mode<synchronous>, transform_indices = @transform_6, window_bounds = array<i64: 1, 32, 32>}, {pipeline_mode = #tpu.pipeline_mode<synchronous>, transform_indices = @transform_7, window_bounds = array<i64: 1, 1, 32>}, {pipeline_mode = #tpu.pipeline_mode<synchronous>, transform_indices = @transform_8, window_bounds = array<i64: 1, 32, 32>}, {pipeline_mode = #tpu.pipeline_mode<synchronous>, transform_indices = @transform_9, window_bounds = array<i64: 1, 1, 32>}, {pipeline_mode = #tpu.pipeline_mode<synchronous>, transform_indices = @transform_10, window_bounds = array<i64: 1, 32, 32>}, {pipeline_mode = #tpu.pipeline_mode<synchronous>, transform_indices = @transform_11, window_bounds = array<i64: 1, 32>}, {transform_indices = @transform_12, window_bounds = array<i64: 1, 8, 32>}]} {
    %c0 = arith.constant 0 : index
    %c0_0 = arith.constant 0 : index
    %c0_1 = arith.constant 0 : index
    %0 = vector.load %arg2[%c0, %c0_0, %c0_1] : memref<1x8x32xf32, #tpu.memory_space<vmem>>, vector<1x8x32xf32>
    %1 = vector.shape_cast %0 : vector<1x8x32xf32> to vector<8x32xf32>
    %c0_2 = arith.constant 0 : index
    %c0_3 = arith.constant 0 : index
    %c0_4 = arith.constant 0 : index
    %2 = vector.load %arg3[%c0_2, %c0_3, %c0_4] : memref<1x8x32xf32, #tpu.memory_space<vmem>>, vector<1x8x32xf32>
    %3 = vector.shape_cast %2 : vector<1x8x32xf32> to vector<8x32xf32>
    %c0_5 = arith.constant 0 : index
    %c0_6 = arith.constant 0 : index
    %c0_7 = arith.constant 0 : index
    %4 = vector.load %arg4[%c0_5, %c0_6, %c0_7] : memref<1x8x32xf32, #tpu.memory_space<vmem>>, vector<1x8x32xf32>
    %5 = vector.shape_cast %4 : vector<1x8x32xf32> to vector<8x32xf32>
    %6 = arith.index_cast %arg1 : i32 to index
    %c0_8 = arith.constant 0 : index
    %c0_9 = arith.constant 0 : index
    %7 = vector.load %arg6[%6, %c0_8, %c0_9] : memref<1x32x32xf32, #tpu.memory_space<vmem>>, vector<1x32x32xf32>
    %8 = vector.shape_cast %7 : vector<1x32x32xf32> to vector<32x32xf32>
    %9 = arith.index_cast %arg1 : i32 to index
    %c0_10 = arith.constant 0 : index
    %c0_11 = arith.constant 0 : index
    %10 = vector.load %arg8[%9, %c0_10, %c0_11] : memref<1x32x32xf32, #tpu.memory_space<vmem>>, vector<1x32x32xf32>
    %11 = vector.shape_cast %10 : vector<1x32x32xf32> to vector<32x32xf32>
    %12 = arith.index_cast %arg1 : i32 to index
    %c0_12 = arith.constant 0 : index
    %c0_13 = arith.constant 0 : index
    %13 = vector.load %arg10[%12, %c0_12, %c0_13] : memref<1x32x32xf32, #tpu.memory_space<vmem>>, vector<1x32x32xf32>
    %14 = vector.shape_cast %13 : vector<1x32x32xf32> to vector<32x32xf32>
    %cst = arith.constant dense<0.000000e+00> : vector<8x32xf32>
    %15 = tpu.matmul %1, %8, %cst {dimension_numbers = #tpu.dot_dimension_numbers<[1], [0], [0], [1], [0, 0, 1, 1], [], []>} : vector<8x32xf32>, vector<32x32xf32>, vector<8x32xf32> -> vector<8x32xf32>
    %16 = arith.index_cast %arg1 : i32 to index
    %c0_14 = arith.constant 0 : index
    %c0_15 = arith.constant 0 : index
    %17 = vector.load %arg7[%16, %c0_14, %c0_15] : memref<1x1x32xf32, #tpu.memory_space<vmem>>, vector<1x1x32xf32>
    %18 = vector.shape_cast %17 : vector<1x1x32xf32> to vector<1x32xf32>
    %19 = vector.broadcast %18 : vector<1x32xf32> to vector<8x32xf32>
    %20 = arith.addf %15, %19 : vector<8x32xf32>
    %cst_16 = arith.constant dense<0.000000e+00> : vector<8x32xf32>
    %21 = tpu.matmul %3, %11, %cst_16 {dimension_numbers = #tpu.dot_dimension_numbers<[1], [0], [0], [1], [0, 0, 1, 1], [], []>} : vector<8x32xf32>, vector<32x32xf32>, vector<8x32xf32> -> vector<8x32xf32>
    %22 = arith.index_cast %arg1 : i32 to index
    %c0_17 = arith.constant 0 : index
    %c0_18 = arith.constant 0 : index
    %23 = vector.load %arg9[%22, %c0_17, %c0_18] : memref<1x1x32xf32, #tpu.memory_space<vmem>>, vector<1x1x32xf32>
    %24 = vector.shape_cast %23 : vector<1x1x32xf32> to vector<1x32xf32>
    %25 = vector.broadcast %24 : vector<1x32xf32> to vector<8x32xf32>
    %26 = arith.addf %21, %25 : vector<8x32xf32>
    %cst_19 = arith.constant dense<0.000000e+00> : vector<8x32xf32>
    %27 = tpu.matmul %5, %14, %cst_19 {dimension_numbers = #tpu.dot_dimension_numbers<[1], [0], [0], [1], [0, 0, 1, 1], [], []>} : vector<8x32xf32>, vector<32x32xf32>, vector<8x32xf32> -> vector<8x32xf32>
    %28 = arith.index_cast %arg1 : i32 to index
    %c0_20 = arith.constant 0 : index
    %c0_21 = arith.constant 0 : index
    %29 = vector.load %arg11[%28, %c0_20, %c0_21] : memref<1x1x32xf32, #tpu.memory_space<vmem>>, vector<1x1x32xf32>
    %30 = vector.shape_cast %29 : vector<1x1x32xf32> to vector<1x32xf32>
    %31 = vector.broadcast %30 : vector<1x32xf32> to vector<8x32xf32>
    %32 = arith.addf %27, %31 : vector<8x32xf32>
    %c0_22 = arith.constant 0 : index
    %c0_23 = arith.constant 0 : index
    %c0_24 = arith.constant 0 : index
    %33 = vector.load %arg5[%c0_22, %c0_23, %c0_24] : memref<1x8x8xf32, #tpu.memory_space<vmem>>, vector<1x8x8xf32>
    %34 = vector.shape_cast %33 : vector<1x8x8xf32> to vector<8x8xf32>
    %35 = vector.extract_strided_slice %20 {offsets = [0, 0], sizes = [8, 8], strides = [1, 1]} : vector<8x32xf32> to vector<8x8xf32>
    %36 = vector.extract_strided_slice %26 {offsets = [0, 0], sizes = [8, 8], strides = [1, 1]} : vector<8x32xf32> to vector<8x8xf32>
    %cst_25 = arith.constant dense<0.000000e+00> : vector<8x8xf32>
    %37 = tpu.matmul %35, %36, %cst_25 {dimension_numbers = #tpu.dot_dimension_numbers<[1], [1], [0], [0], [0, 0, 1, 0], [], []>} : vector<8x8xf32>, vector<8x8xf32>, vector<8x8xf32> -> vector<8x8xf32>
    %38 = arith.addf %37, %34 : vector<8x8xf32>
    %cst_26 = arith.constant dense<0xFF800000> : vector<8xf32>
    %39 = vector.multi_reduction <maximumf>, %38, %cst_26 [1] : vector<8x8xf32> to vector<8xf32>
    %40 = vector.shape_cast %39 : vector<8xf32> to vector<8x1xf32>
    %41 = vector.broadcast %40 : vector<8x1xf32> to vector<8x8xf32>
    %42 = arith.subf %38, %41 : vector<8x8xf32>
    %43 = math.exp %42 : vector<8x8xf32>
    %cst_27 = arith.constant dense<0.000000e+00> : vector<8xf32>
    %44 = vector.multi_reduction <add>, %43, %cst_27 [1] : vector<8x8xf32> to vector<8xf32>
    %45 = vector.shape_cast %44 : vector<8xf32> to vector<8x1xf32>
    %46 = tpu.reciprocal %45 : vector<8x1xf32> -> vector<8x1xf32>
    %47 = vector.extract_strided_slice %32 {offsets = [0, 0], sizes = [8, 8], strides = [1, 1]} : vector<8x32xf32> to vector<8x8xf32>
    %cst_28 = arith.constant dense<0.000000e+00> : vector<8x8xf32>
    %48 = tpu.matmul %43, %47, %cst_28 {dimension_numbers = #tpu.dot_dimension_numbers<[1], [0], [0], [1], [0, 0, 1, 1], [], []>} : vector<8x8xf32>, vector<8x8xf32>, vector<8x8xf32> -> vector<8x8xf32>
    %49 = vector.broadcast %46 : vector<8x1xf32> to vector<8x8xf32>
    %50 = arith.mulf %48, %49 : vector<8x8xf32>
    %51 = vector.extract_strided_slice %20 {offsets = [0, 8], sizes = [8, 8], strides = [1, 1]} : vector<8x32xf32> to vector<8x8xf32>
    %52 = vector.extract_strided_slice %26 {offsets = [0, 8], sizes = [8, 8], strides = [1, 1]} : vector<8x32xf32> to vector<8x8xf32>
    %cst_29 = arith.constant dense<0.000000e+00> : vector<8x8xf32>
    %53 = tpu.matmul %51, %52, %cst_29 {dimension_numbers = #tpu.dot_dimension_numbers<[1], [1], [0], [0], [0, 0, 1, 0], [], []>} : vector<8x8xf32>, vector<8x8xf32>, vector<8x8xf32> -> vector<8x8xf32>
    %54 = arith.addf %53, %34 : vector<8x8xf32>
    %cst_30 = arith.constant dense<0xFF800000> : vector<8xf32>
    %55 = vector.multi_reduction <maximumf>, %54, %cst_30 [1] : vector<8x8xf32> to vector<8xf32>
    %56 = vector.shape_cast %55 : vector<8xf32> to vector<8x1xf32>
    %57 = vector.broadcast %56 : vector<8x1xf32> to vector<8x8xf32>
    %58 = arith.subf %54, %57 : vector<8x8xf32>
    %59 = math.exp %58 : vector<8x8xf32>
    %cst_31 = arith.constant dense<0.000000e+00> : vector<8xf32>
    %60 = vector.multi_reduction <add>, %59, %cst_31 [1] : vector<8x8xf32> to vector<8xf32>
    %61 = vector.shape_cast %60 : vector<8xf32> to vector<8x1xf32>
    %62 = tpu.reciprocal %61 : vector<8x1xf32> -> vector<8x1xf32>
    %63 = vector.extract_strided_slice %32 {offsets = [0, 8], sizes = [8, 8], strides = [1, 1]} : vector<8x32xf32> to vector<8x8xf32>
    %cst_32 = arith.constant dense<0.000000e+00> : vector<8x8xf32>
    %64 = tpu.matmul %59, %63, %cst_32 {dimension_numbers = #tpu.dot_dimension_numbers<[1], [0], [0], [1], [0, 0, 1, 1], [], []>} : vector<8x8xf32>, vector<8x8xf32>, vector<8x8xf32> -> vector<8x8xf32>
    %65 = vector.broadcast %62 : vector<8x1xf32> to vector<8x8xf32>
    %66 = arith.mulf %64, %65 : vector<8x8xf32>
    %67 = vector.extract_strided_slice %20 {offsets = [0, 16], sizes = [8, 8], strides = [1, 1]} : vector<8x32xf32> to vector<8x8xf32>
    %68 = vector.extract_strided_slice %26 {offsets = [0, 16], sizes = [8, 8], strides = [1, 1]} : vector<8x32xf32> to vector<8x8xf32>
    %cst_33 = arith.constant dense<0.000000e+00> : vector<8x8xf32>
    %69 = tpu.matmul %67, %68, %cst_33 {dimension_numbers = #tpu.dot_dimension_numbers<[1], [1], [0], [0], [0, 0, 1, 0], [], []>} : vector<8x8xf32>, vector<8x8xf32>, vector<8x8xf32> -> vector<8x8xf32>
    %70 = arith.addf %69, %34 : vector<8x8xf32>
    %cst_34 = arith.constant dense<0xFF800000> : vector<8xf32>
    %71 = vector.multi_reduction <maximumf>, %70, %cst_34 [1] : vector<8x8xf32> to vector<8xf32>
    %72 = vector.shape_cast %71 : vector<8xf32> to vector<8x1xf32>
    %73 = vector.broadcast %72 : vector<8x1xf32> to vector<8x8xf32>
    %74 = arith.subf %70, %73 : vector<8x8xf32>
    %75 = math.exp %74 : vector<8x8xf32>
    %cst_35 = arith.constant dense<0.000000e+00> : vector<8xf32>
    %76 = vector.multi_reduction <add>, %75, %cst_35 [1] : vector<8x8xf32> to vector<8xf32>
    %77 = vector.shape_cast %76 : vector<8xf32> to vector<8x1xf32>
    %78 = tpu.reciprocal %77 : vector<8x1xf32> -> vector<8x1xf32>
    %79 = vector.extract_strided_slice %32 {offsets = [0, 16], sizes = [8, 8], strides = [1, 1]} : vector<8x32xf32> to vector<8x8xf32>
    %cst_36 = arith.constant dense<0.000000e+00> : vector<8x8xf32>
    %80 = tpu.matmul %75, %79, %cst_36 {dimension_numbers = #tpu.dot_dimension_numbers<[1], [0], [0], [1], [0, 0, 1, 1], [], []>} : vector<8x8xf32>, vector<8x8xf32>, vector<8x8xf32> -> vector<8x8xf32>
    %81 = vector.broadcast %78 : vector<8x1xf32> to vector<8x8xf32>
    %82 = arith.mulf %80, %81 : vector<8x8xf32>
    %83 = vector.extract_strided_slice %20 {offsets = [0, 24], sizes = [8, 8], strides = [1, 1]} : vector<8x32xf32> to vector<8x8xf32>
    %84 = vector.extract_strided_slice %26 {offsets = [0, 24], sizes = [8, 8], strides = [1, 1]} : vector<8x32xf32> to vector<8x8xf32>
    %cst_37 = arith.constant dense<0.000000e+00> : vector<8x8xf32>
    %85 = tpu.matmul %83, %84, %cst_37 {dimension_numbers = #tpu.dot_dimension_numbers<[1], [1], [0], [0], [0, 0, 1, 0], [], []>} : vector<8x8xf32>, vector<8x8xf32>, vector<8x8xf32> -> vector<8x8xf32>
    %86 = arith.addf %85, %34 : vector<8x8xf32>
    %cst_38 = arith.constant dense<0xFF800000> : vector<8xf32>
    %87 = vector.multi_reduction <maximumf>, %86, %cst_38 [1] : vector<8x8xf32> to vector<8xf32>
    %88 = vector.shape_cast %87 : vector<8xf32> to vector<8x1xf32>
    %89 = vector.broadcast %88 : vector<8x1xf32> to vector<8x8xf32>
    %90 = arith.subf %86, %89 : vector<8x8xf32>
    %91 = math.exp %90 : vector<8x8xf32>
    %cst_39 = arith.constant dense<0.000000e+00> : vector<8xf32>
    %92 = vector.multi_reduction <add>, %91, %cst_39 [1] : vector<8x8xf32> to vector<8xf32>
    %93 = vector.shape_cast %92 : vector<8xf32> to vector<8x1xf32>
    %94 = tpu.reciprocal %93 : vector<8x1xf32> -> vector<8x1xf32>
    %95 = vector.extract_strided_slice %32 {offsets = [0, 24], sizes = [8, 8], strides = [1, 1]} : vector<8x32xf32> to vector<8x8xf32>
    %cst_40 = arith.constant dense<0.000000e+00> : vector<8x8xf32>
    %96 = tpu.matmul %91, %95, %cst_40 {dimension_numbers = #tpu.dot_dimension_numbers<[1], [0], [0], [1], [0, 0, 1, 1], [], []>} : vector<8x8xf32>, vector<8x8xf32>, vector<8x8xf32> -> vector<8x8xf32>
    %97 = vector.broadcast %94 : vector<8x1xf32> to vector<8x8xf32>
    %98 = arith.mulf %96, %97 : vector<8x8xf32>
    %99 = tpu.concatenate %50, %66, %82, %98 in 1 : vector<8x8xf32>, vector<8x8xf32>, vector<8x8xf32>, vector<8x8xf32> -> vector<8x32xf32>
    %100 = arith.index_cast %arg1 : i32 to index
    %c0_41 = arith.constant 0 : index
    %c0_42 = arith.constant 0 : index
    %101 = vector.load %arg12[%100, %c0_41, %c0_42] : memref<1x32x32xf32, #tpu.memory_space<vmem>>, vector<1x32x32xf32>
    %102 = vector.shape_cast %101 : vector<1x32x32xf32> to vector<32x32xf32>
    %cst_43 = arith.constant dense<0.000000e+00> : vector<8x32xf32>
    %103 = tpu.matmul %99, %102, %cst_43 {dimension_numbers = #tpu.dot_dimension_numbers<[1], [0], [0], [1], [0, 0, 1, 1], [], []>} : vector<8x32xf32>, vector<32x32xf32>, vector<8x32xf32> -> vector<8x32xf32>
    %c0_i32 = arith.constant 0 : i32
    %104 = arith.cmpi eq, %arg1, %c0_i32 : i32
    %105 = arith.extui %104 : i1 to i32
    %c0_i32_44 = arith.constant 0 : i32
    %106 = arith.cmpi ne, %105, %c0_i32_44 : i32
    scf.if %106 {
      %cst_51 = arith.constant 0.000000e+00 : f32
      %113 = vector.broadcast %cst_51 : f32 to vector<8x32xf32>
      %c0_52 = arith.constant 0 : index
      %c0_53 = arith.constant 0 : index
      %114 = vector.load %arg15[%c0_52, %c0_53] : memref<8x32xf32, #tpu.memory_space<vmem>>, vector<8x32xf32>
      tpu.vector_store %arg15[%c0_52, %c0_53], %113 {strides = array<i32>} : memref<8x32xf32, #tpu.memory_space<vmem>>, vector<8x32xf32>,
    } else {
    }
    %c0_45 = arith.constant 0 : index
    %c0_46 = arith.constant 0 : index
    %107 = vector.load %arg15[%c0_45, %c0_46] : memref<8x32xf32, #tpu.memory_space<vmem>>, vector<8x32xf32>
    %108 = arith.addf %107, %103 : vector<8x32xf32>
    %c0_47 = arith.constant 0 : index
    %c0_48 = arith.constant 0 : index
    %109 = vector.load %arg15[%c0_47, %c0_48] : memref<8x32xf32, #tpu.memory_space<vmem>>, vector<8x32xf32>
    tpu.vector_store %arg15[%c0_47, %c0_48], %108 {strides = array<i32>} : memref<8x32xf32, #tpu.memory_space<vmem>>, vector<8x32xf32>,
    %c0_i32_49 = arith.constant 0 : i32
    %110 = arith.cmpi eq, %arg1, %c0_i32_49 : i32
    %111 = arith.extui %110 : i1 to i32
    %c0_i32_50 = arith.constant 0 : i32
    %112 = arith.cmpi ne, %111, %c0_i32_50 : i32
    scf.if %112 {
      %c0_51 = arith.constant 0 : index
      %c0_52 = arith.constant 0 : index
      %113 = vector.load %arg15[%c0_51, %c0_52] : memref<8x32xf32, #tpu.memory_space<vmem>>, vector<8x32xf32>
      %c0_53 = arith.constant 0 : index
      %c0_54 = arith.constant 0 : index
      %114 = vector.load %arg13[%c0_53, %c0_54] : memref<1x32xf32, #tpu.memory_space<vmem>>, vector<1x32xf32>
      %115 = vector.broadcast %114 : vector<1x32xf32> to vector<8x32xf32>
      %116 = arith.addf %113, %115 : vector<8x32xf32>
      %c0_55 = arith.constant 0 : index
      %c0_56 = arith.constant 0 : index
      %c0_57 = arith.constant 0 : index
      %117 = vector.load %arg14[%c0_55, %c0_56, %c0_57] : memref<1x8x32xf32, #tpu.memory_space<vmem>>, vector<1x8x32xf32>
      %118 = vector.shape_cast %117 : vector<1x8x32xf32> to vector<8x32xf32>
      %119 = vector.shape_cast %116 : vector<8x32xf32> to vector<1x8x32xf32>
      tpu.vector_store %arg14[%c0_55, %c0_56, %c0_57], %119 {strides = array<i32>} : memref<1x8x32xf32, #tpu.memory_space<vmem>>, vector<1x8x32xf32>,
    } else {
    }
    return
  }
  func.func @transform_0(%arg0: i32, %arg1: i32) -> (i32, i32, i32) {
    %c0_i32 = arith.constant 0 : i32
    %c0_i32_0 = arith.constant 0 : i32
    %c0_i32_1 = arith.constant 0 : i32
    return %arg0, %c0_i32, %c0_i32_0 : i32, i32, i32
  }
  func.func @transform_1(%arg0: i32, %arg1: i32) -> (i32, i32, i32) {
    %c0_i32 = arith.constant 0 : i32
    %c0_i32_0 = arith.constant 0 : i32
    %c0_i32_1 = arith.constant 0 : i32
    return %arg0, %c0_i32, %c0_i32_0 : i32, i32, i32
  }
  func.func @transform_2(%arg0: i32, %arg1: i32) -> (i32, i32, i32) {
    %c0_i32 = arith.constant 0 : i32
    %c0_i32_0 = arith.constant 0 : i32
    %c0_i32_1 = arith.constant 0 : i32
    return %arg0, %c0_i32, %c0_i32_0 : i32, i32, i32
  }
  func.func @transform_3(%arg0: i32, %arg1: i32) -> (i32, i32, i32) {
    %c0_i32 = arith.constant 0 : i32
    %c0_i32_0 = arith.constant 0 : i32
    %c0_i32_1 = arith.constant 0 : i32
    return %arg0, %c0_i32, %c0_i32_0 : i32, i32, i32
  }
  func.func @transform_4(%arg0: i32, %arg1: i32) -> (i32, i32, i32) {
    %c0_i32 = arith.constant 0 : i32
    %c0_i32_0 = arith.constant 0 : i32
    %c0_i32_1 = arith.constant 0 : i32
    %c0_i32_2 = arith.constant 0 : i32
    return %c0_i32, %c0_i32_0, %c0_i32_1 : i32, i32, i32
  }
  func.func @transform_5(%arg0: i32, %arg1: i32) -> (i32, i32, i32) {
    %c0_i32 = arith.constant 0 : i32
    %c0_i32_0 = arith.constant 0 : i32
    %c0_i32_1 = arith.constant 0 : i32
    %c0_i32_2 = arith.constant 0 : i32
    return %c0_i32, %c0_i32_0, %c0_i32_1 : i32, i32, i32
  }
  func.func @transform_6(%arg0: i32, %arg1: i32) -> (i32, i32, i32) {
    %c0_i32 = arith.constant 0 : i32
    %c0_i32_0 = arith.constant 0 : i32
    %c0_i32_1 = arith.constant 0 : i32
    %c0_i32_2 = arith.constant 0 : i32
    return %c0_i32, %c0_i32_0, %c0_i32_1 : i32, i32, i32
  }
  func.func @transform_7(%arg0: i32, %arg1: i32) -> (i32, i32, i32) {
    %c0_i32 = arith.constant 0 : i32
    %c0_i32_0 = arith.constant 0 : i32
    %c0_i32_1 = arith.constant 0 : i32
    %c0_i32_2 = arith.constant 0 : i32
    return %c0_i32, %c0_i32_0, %c0_i32_1 : i32, i32, i32
  }
  func.func @transform_8(%arg0: i32, %arg1: i32) -> (i32, i32, i32) {
    %c0_i32 = arith.constant 0 : i32
    %c0_i32_0 = arith.constant 0 : i32
    %c0_i32_1 = arith.constant 0 : i32
    %c0_i32_2 = arith.constant 0 : i32
    return %c0_i32, %c0_i32_0, %c0_i32_1 : i32, i32, i32
  }
  func.func @transform_9(%arg0: i32, %arg1: i32) -> (i32, i32, i32) {
    %c0_i32 = arith.constant 0 : i32
    %c0_i32_0 = arith.constant 0 : i32
    %c0_i32_1 = arith.constant 0 : i32
    %c0_i32_2 = arith.constant 0 : i32
    return %c0_i32, %c0_i32_0, %c0_i32_1 : i32, i32, i32
  }
  func.func @transform_10(%arg0: i32, %arg1: i32) -> (i32, i32, i32) {
    %c0_i32 = arith.constant 0 : i32
    %c0_i32_0 = arith.constant 0 : i32
    %c0_i32_1 = arith.constant 0 : i32
    %c0_i32_2 = arith.constant 0 : i32
    return %c0_i32, %c0_i32_0, %c0_i32_1 : i32, i32, i32
  }
  func.func @transform_11(%arg0: i32, %arg1: i32) -> (i32, i32) {
    %c0_i32 = arith.constant 0 : i32
    %c0_i32_0 = arith.constant 0 : i32
    %c0_i32_1 = arith.constant 0 : i32
    return %c0_i32, %c0_i32_0 : i32, i32
  }
  func.func @transform_12(%arg0: i32, %arg1: i32) -> (i32, i32, i32) {
    %c0_i32 = arith.constant 0 : i32
    %c0_i32_0 = arith.constant 0 : i32
    %c0_i32_1 = arith.constant 0 : i32
    return %arg0, %c0_i32, %c0_i32_0 : i32, i32, i32
  }
}

</mosaic_0001>

<bundles_post_ra>
// kernel: tpu_custom_call.1
= control target key start
LH: loop header
LB: loop body
LE: loop exit
PB: predicated region body
PF: predicated region fallthrough
CT: control target
= control target key end

     0   :  { %s2221_s0 = inlined_call_operand.hbm [shape: f32[2,8,32], index: 0, kind: input, shape index: {}]   ;;  %s2222_s1 = inlined_call_operand.hbm [shape: f32[2,8,32], index: 1, kind: input, shape index: {}]   ;;  %s2223_s2 = inlined_call_operand.hbm [shape: f32[2,8,32], index: 2, kind: input, shape index: {}]   ;;  %s2224_s3 = inlined_call_operand.hbm [shape: f32[2,8,8], index: 3, kind: input, shape index: {}]   ;;  %s2225_s4 = inlined_call_operand.hbm [shape: f32[1,32,32], index: 4, kind: input, shape index: {}]   ;;  %s2226_s5 = inlined_call_operand.vmem [shape: f32[1,1,32], index: 5, kind: input, shape index: {}]   ;;  %s2227_s6 = inlined_call_operand.hbm [shape: f32[1,32,32], index: 6, kind: input, shape index: {}]   ;;  %s2228_s7 = inlined_call_operand.vmem [shape: f32[1,1,32], index: 7, kind: input, shape index: {}]   ;;  %s2229_s8 = inlined_call_operand.hbm [shape: f32[1,32,32], index: 8, kind: input, shape index: {}]   ;;  %s2230_s9 = inlined_call_operand.vmem [shape: f32[1,1,32], index: 9, kind: input, shape index: {}]   ;;  %s2231_s10 = inlined_call_operand.hbm [shape: f32[1,32,32], index: 10, kind: input, shape index: {}]   ;;  %s2232_s11 = inlined_call_operand.vmem [shape: f32[1,32], index: 11, kind: input, shape index: {}]   ;;  %s2233_s12 = inlined_call_operand.hbm [shape: f32[2,8,32], index: 12, kind: output, shape index: {}]  }
   0x1   :  { %2247 = sst [smem:[#allocation32_spill]] %s2221_s0 }
   0x2   :  { %2248 = sst [smem:[#allocation33_spill]] %s2222_s1 }
   0x3   :  { %2249 = sst [smem:[#allocation34_spill]] %s2225_s4 }
   0x4   :  { %2250 = sst [smem:[#allocation35_spill]] %s2227_s6 }
   0x5   :  { %2251 = sst [smem:[#allocation36_spill]] %s2229_s8 }
   0x6   :  { %2252 = sst [smem:[#allocation37_spill]] %s2232_s11 }
   0x7   :  { %2253 = sst [smem:[#allocation38_spill]] %s2233_s12 }
   0x8   :  { %17 = vsyncpa [#allocation4], 0 }
   0x9   :  { %19 = vsyncpa [#allocation4 + $0x1], 0 }
   0xa   :  { %20 = vsyncpa [#allocation7], 0 }
   0xb   :  { %22 = vsyncpa [#allocation7 + $0x1], 0 }
   0xc   :  { %23 = vsyncpa [#allocation10], 0 }
   0xd   :  { %25 = vsyncpa [#allocation10 + $0x1], 0 }
   0xe   :  { %26 = vsyncpa [#allocation13], 0 }
   0xf   :  { %27 = vsyncpa [#allocation16], 0 }
  0x10   :  { %28 = vsyncpa [#allocation5], 0 }
  0x11   :  { %30 = vsyncpa [#allocation5 + $0x1], 0  ;;  %s1924_s21 = smov 0   ;;  %s1926_s22 = smov 0  }
  0x12   :  { %s1928_s23 = smov 0   ;;  %s1930_s24 = smov 0  }
  0x13   :  { %s1932_s25 = smov 0   ;;  %s1934_s26 = smov 0  }
  0x14 LB: > { %2254 = sst [smem:[#allocation25_spill]] %s1824_s21  ;;  %s1955_s27 = sadd.s32 4294967295, %s1844_s26   ;;  %s1844_s26 = sphi %s1934_s26, %s36_s26   ;;  %s1840_s25 = sphi %s1932_s25, %s2284_s25   ;;  %s1836_s24 = sphi %s1930_s24, %s2283_s24   ;;  %s1832_s23 = sphi %s1928_s23, %s2287_s23   ;;  %s1828_s22 = sphi %s1926_s22, %s2286_s22   ;;  %s1824_s21 = sphi %s1924_s21, %s2285_s21  }
  0x15   : > { %2255 = sst [smem:[#allocation26_spill]] %s1836_s24  ;;  %s1310_s28 = sadd.s32 4294967294, %s1844_s26  }
  0x16   : > { %2256 = sst [smem:[#allocation27_spill]] %s1840_s25  ;;  %p68_p0 = scmp.ne.s32.totalorder %s1828_s22, %s1824_s21 }
  0x17   : > { %p69_p1 = scmp.eq.s32.totalorder %s1955_s27, 0  ;;  %p338_p2 = scmp.eq.s32.totalorder %s1955_s27, 1 }
  0x18   : > { %p344_p3 = scmp.eq.s32.totalorder %s1310_s28, 1  ;;  %p1311_p5 = scmp.ge.s32.totalorder %s1844_s26, 1 }
  0x19   : > { %p1964_p4 = por %p69_p1, %p68_p0  ;;  %p351_p7 = scmp.lt.s32.totalorder %s1844_s26, 3 }
  0x1a   : > { %p1969_p6 = por %p344_p3, %p68_p0  ;;  %s2260_s4 = sld [smem:[#allocation34_spill]] }
  0x1b   : > { %p1977_p8 = pnand %p1311_p5, %p351_p7  ;;  %s1846_s17 = smov [#allocation11]  }
  0x1c   : > { %s2258_s30 = scalar_select %p1969_p6, 1, 0 }
  0x1d   : > { %p1381_p9 = pneg %p1977_p8  ;;  %s364_s18 = sshll.u32 %s1846_s17, 4  ;;  %s365_s18 = int_to_ptr.vmem [resolvable:$true] %s364_s18 }
  0x1e   : > { %2259 = sst [smem:[#allocation28_spill]] %s2258_s30  ;;  %p1316_p11 = scmp.ge.s32.totalorder %s1844_s26, 2 }
  0x1f   : > { %p1985_p10 = pnand %p1381_p9, %p69_p1  ;;  %s2263_s6 = sld [smem:[#allocation35_spill]] }
  0x20   : > { %s362_s15 = sshll.u32 %s2260_s4, 4  ;;  %s2235_s14 = smov 128   ;;  %s363_s15 = int_to_ptr.hbm [resolvable:$true] %s362_s15 }
  0x21   : > { %s2237_s17 = smov 8   ;;  %s1849_s4 = smov [#allocation12]  }
  0x22   : > { %1384 = dma.hbm_to_vmem [thread:$0]  (!%p1985_p10), %s363_s15, 512, %s365_s18, [#allocation10], %s2235_s14, %s2235_s14, %s2237_s17  }
  0x23   : > { %s381_s30 = sshll.u32 %s1849_s4, 4  ;;  %s48_s20 = sadd.s32 1, %s1840_s25  ;;  %s382_s30 = int_to_ptr.vmem [resolvable:$true] %s381_s30 }
  0x24   : > { %s55_s28 = sadd.s32 1, %s1832_s23  ;;  %p50_p12 = scmp.ge.s32.totalorder %s48_s20, 2 }
  0x25   : > { %s379_s13 = sshll.u32 %s2263_s6, 4  ;;  %p62_p13 = scmp.ne.s32.totalorder %s1832_s23, %s1828_s22  ;;  %s380_s13 = int_to_ptr.hbm [resolvable:$true] %s379_s13 }
  0x26   : > { %1387 = dma.hbm_to_vmem [thread:$0]  (!%p1985_p10), %s380_s13, 512, %s382_s30, [#allocation13], %s2235_s14, %s2235_s14, %s2237_s17  }
  0x27   : > { %p63_p0 = scmp.eq.s32.totalorder %s1844_s26, 0  ;;  %p1415_p3 = scmp.lt.s32.totalorder %s1844_s26, 2 }
  0x28   : > { %s2289_s20 = smov (%p50_p12, %s48_s20), 0  ;;  %p2013_p7 = por %p338_p2, %p62_p13 }
  0x29   : > { %2264 = sst [smem:[#allocation29_spill]] %s2289_s20  ;;  %p64_p5 = por %p63_p0, %p62_p13 }
  0x2a   : > { %s2265_s4 = scalar_select %p2013_p7, 1, 0 }
  0x2b   : > { %s52_s15 = ssub.s32 %s1840_s25, %s2289_s20  ;;  %s2241_s30 = sand.u32 1, %s1832_s23  }
  0x2c   : > { %2266 = sst [smem:[#allocation30_spill]] %s2265_s4  ;;  %p53_p9 = scmp.eq.s32.totalorder %s52_s15, 0 }
  0x2d   : > { %s2022_s18 = sshll.u32 %s2241_s30, 3  ;;  %s2025_s13 = sshll.u32 %s1840_s25, 3 }
  0x2e   : > { %p2027_p12 = pnand %p1415_p3, %p64_p5  ;;  %s2246_s6 = sand.u32 1, %s1844_s26  }
  0x2f   : > { %s2032_s17 = scalar_select %p53_p9, %s1832_s23, %s55_s28  }
  0x30   : > { %s2269_s1 = sld [smem:[#allocation33_spill]]  ;;  %s455_s11 = scalar_lea.vmem [#allocation6], %s2022_s18 }
  0x31   : > { %2268 = sst [smem:[#allocation31_spill]] %s2032_s17  ;;  %s463_s30 = sshll.u32 %s455_s11, 4  ;;  %s464_s30 = int_to_ptr.vmem [resolvable:$true] %s463_s30 }
  0x32   : > { %s2042_s25 = scalar_lea.sflag [#allocation7], %s2246_s6  ;;  %s2270_s8 = sld [smem:[#allocation36_spill]] }
  0x33   : > { %s1850_s21 = smov [#allocation14]   ;;  %s2271_s6 = smov 8  }
  0x34   : > { %s398_s11 = sshll.u32 %s1850_s21, 4  ;;  %s2272_s24 = smov 128   ;;  %s399_s11 = int_to_ptr.vmem [resolvable:$true] %s398_s11 }
  0x35   : > { %s1851_s17 = smov [#allocation15]   ;;  %s2273_s0 = sld [smem:[#allocation32_spill]] }
  0x36   : > { %s459_s15 = scalar_lea.hbm %s2269_s1, %s2025_s13  ;;  %s413_s1 = sshll.u32 %s2231_s10, 4  ;;  %s414_s1 = int_to_ptr.hbm [resolvable:$true] %s413_s1 }
  0x37   : > { %s461_s4 = sshll.u32 %s459_s15, 4  ;;  %s436_s20 = scalar_lea.vmem [#allocation3], %s2022_s18  ;;  %s462_s4 = int_to_ptr.hbm [resolvable:$true] %s461_s4 }
  0x38   : > { %1400 = dma.hbm_to_vmem [thread:$0]  (!%p2027_p12), %s462_s4, 128, %s464_s30, %s2042_s25  }
  0x39   : > { %s396_s12 = sshll.u32 %s2270_s8, 4  ;;  %s415_s4 = sshll.u32 %s1851_s17, 4  ;;  %s397_s12 = int_to_ptr.hbm [resolvable:$true] %s396_s12  ;;  %s416_s4 = int_to_ptr.vmem [resolvable:$true] %s415_s4 }
  0x3a   : > { %1390 = dma.hbm_to_vmem [thread:$0]  (!%p1985_p10), %s397_s12, 512, %s399_s11, [#allocation13], %s2272_s24, %s2272_s24, %s2271_s6  }
  0x3b   : > { %1393 = dma.hbm_to_vmem [thread:$0]  (!%p1985_p10), %s414_s1, 512, %s416_s4, [#allocation16], %s2272_s24, %s2272_s24, %s2271_s6  }
  0x3c   : > { %s440_s21 = scalar_lea.hbm %s2273_s0, %s2025_s13  ;;  %s444_s15 = sshll.u32 %s436_s20, 4  ;;  %s445_s15 = int_to_ptr.vmem [resolvable:$true] %s444_s15 }
  0x3d   : > { %s442_s12 = sshll.u32 %s440_s21, 4  ;;  %s2274_s11 = sand.u32 1, %s1832_s23   ;;  %s443_s12 = int_to_ptr.hbm [resolvable:$true] %s442_s12 }
  0x3e   : > { %s433_s19 = scalar_lea.sflag [#allocation4], %s2274_s11  ;;  %s478_s1 = scalar_lea.hbm %s2223_s2, %s2025_s13 }
  0x3f   : > { %1397 = dma.hbm_to_vmem [thread:$0]  (!%p2027_p12), %s443_s12, 128, %s445_s15, %s433_s19  }
  0x40   : > { %s474_s6 = scalar_lea.vmem [#allocation8], %s2022_s18  ;;  %s480_s4 = sshll.u32 %s478_s1, 4  ;;  %s481_s4 = int_to_ptr.hbm [resolvable:$true] %s480_s4 }
  0x41   : > { %s482_s24 = sshll.u32 %s474_s6, 4  ;;  %s497_s21 = scalar_lea.hbm %s2224_s3, %s2025_s13  ;;  %s483_s24 = int_to_ptr.vmem [resolvable:$true] %s482_s24 }
  0x42   : > { %1403 = dma.hbm_to_vmem [thread:$0]  (!%p2027_p12), %s481_s4, 128, %s483_s24, %s2042_s25  }
  0x43   : > { %s493_s20 = scalar_lea.vmem [#allocation9], %s2022_s18  ;;  %s499_s0 = sshll.u32 %s497_s21, 4  ;;  %s500_s0 = int_to_ptr.hbm [resolvable:$true] %s499_s0 }
  0x44   : > { %s501_s11 = sshll.u32 %s493_s20, 4  ;;  %s2275_s15 = sand.u32 1, %s1844_s26   ;;  %s502_s11 = int_to_ptr.vmem [resolvable:$true] %s501_s11 }
  0x45   : > { %s490_s12 = scalar_lea.sflag [#allocation10], %s2275_s15  ;;  %510 = sbr.rel (%p1977_p8) target bundleno = 1014 (0x3f6), region = 68 }
  0x46   : > { %1406 = dma.hbm_to_vmem [thread:$0]  (!%p2027_p12), %s500_s0, 128, %s502_s11, %s490_s12  }
  0x47   : > { %s2092_s8 = sand.u32 (!%p1977_p8), 1, %s1828_s22  }
  0x48   : > { %s2095_s25 = sshll.u32 (!%p1977_p8), %s2092_s8, 3  ;;  %s513_s18 = scalar_lea.sflag (!%p1977_p8), [#allocation4], %s2092_s8 }
  0x49   : > { %s516_s13 = scalar_lea.vmem (!%p1977_p8), [#allocation3], %s2095_s25 }
  0x4a   : > { %1795 = dma.done.wait (%p1964_p4), %s513_s18, 128  }
  0x4b   : > { %1797 = vsyncadd (%p1964_p4), %s513_s18, 4294967168  ;;  %s522_s0 = sand.u32 1, %s1955_s27   ;;  %s526_s14 = scalar_lea.vmem [#allocation6], %s2095_s25 }
  0x4c   : > { %s523_s16 = scalar_lea.sflag [#allocation7], %s522_s0 }
  0x4d   : > { %1799 = dma.done.wait (%p1964_p4), %s523_s16, 256  }
  0x4e   : > { %1801 = vsyncadd (%p1964_p4), %s523_s16, 4294967040  ;;  %s536_s19 = scalar_lea.vmem [#allocation8], %s2095_s25  ;;  %s543_s17 = scalar_lea.sflag [#allocation10], %s522_s0 }
  0x4f   : > { %s546_s1 = scalar_lea.vmem [#allocation9], %s2095_s25 }
  0x50   : > { %1803 = dma.done.wait (%p1964_p4), %s543_s17, 128  }
  0x51   : > { %1805 = vsyncadd (%p1964_p4), %s543_s17, 4294967168 }
  0x52   : > { %1807 = dma.done.wait (%p69_p1), [#allocation10], 512  }
  0x53   : > { %1809 = vsyncadd (%p69_p1), [#allocation10], 4294966784 }
  0x54   : > { %1811 = dma.done.wait (%p69_p1), [#allocation13], 1024  }
  0x55   : > { %1813 = vsyncadd (%p69_p1), [#allocation13], 4294966272 }
  0x56   : > { %1815 = dma.done.wait (%p69_p1), [#allocation16], 512  }
  0x57   : > { %1817 = vsyncadd (%p69_p1), [#allocation16], 4294966784  ;;  %v636_v0 = vld [vmem:[#allocation12 + $0x18] sm:$0xff]  ;;  %v635_v1 = vld [vmem:[#allocation12 + $0x10] sm:$0xff]  ;;  %vm647_vm0 = vcmask 261120   ;;  %vm728_vm1 = vcmask 64512  }
  0x58   : > { %v631_v2 = vld [vmem:[#allocation11 + $0x18] sm:$0xff]  ;;  %691 = vmatpush.msra.mxu1 %v636_v0  ;;  %v630_v3 = vld [vmem:[#allocation11 + $0x10] sm:$0xff]  ;;  %v634_v4 = vld [vmem:[#allocation12 + $0x8] sm:$0xff]  ;;  %s1852_s4 = smov 104   ;;  %s1853_s30 = smov 120  }
  0x59   : > { %663 = vmatpush.msra.mxu0 %v631_v2  ;;  %v629_v5 = vld [vmem:[#allocation11 + $0x8] sm:$0xff]  ;;  %v633_v6 = vld [vmem:[#allocation12] sm:$0xff]  ;;  %v624_v8 = vld [vmem:[%s526_s14] sm:$0xff]  ;;  %s1854_s28 = smov 112   ;;  %s1855_s11 = smov 8  }
  0x5a   : > { %692 = vmatpush.msra.mxu1 %v635_v1  ;;  %v628_v7 = vld [vmem:[#allocation11] sm:$0xff]  ;;  %v1482_v10 = vld [vmem:[%s2228_s7] ss:$0 sm:$0xff]  ;;  %v640_v17 = vld [vmem:[#allocation14 + $0x10] sm:$0xff]  ;;  %s1856_s15 = smov 16   ;;  %s1857_s12 = smov 24  }
  0x5b   : > { %664 = vmatpush.msra.mxu0 %v630_v3  ;;  %v623_v9 = vld [vmem:[%s516_s13] sm:$0xff]  ;;  %v1483_v11 = vld [vmem:[%s2226_s5] ss:$0 sm:$0xff]  ;;  %s2276_s18 = sld [smem:[#allocation26_spill]]  ;;  %s622_s6 = scalar_lea.vmem [#allocation17], %s2095_s25 }
  0x5c   : > { %693 = vmatpush.msra.mxu1 %v634_v4  ;;  %v641_v16 = vld [vmem:[#allocation14 + $0x18] sm:$0xff]  ;;  %v639_v18 = vld [vmem:[#allocation14 + $0x8] sm:$0xff]  ;;  %v638_v19 = vld [vmem:[#allocation14] sm:$0xff]  ;;  %s2277_s14 = sld [smem:[#allocation38_spill]]  ;;  %s1113_s24 = sshll.u32 %s622_s6, 4  ;;  %s1114_s24 = int_to_ptr.vmem [resolvable:$true] %s1113_s24 }
  0x5d   : > { %665 = vmatpush.msra.mxu0 %v629_v5  ;;  %719 = vmatpush.msra.mxu2 %v641_v16  ;;  %v625_v20 = vld [vmem:[%s536_s19] sm:$0xff]  ;;  %v727_v27 = vld [vmem:[%s546_s1] sm:$0xff]  ;;  %s2279_s29 = sld [smem:[#allocation37_spill]] }
  0x5e   : > { %694 = vmatpush.msra.mxu1 %v633_v6  ;;  %v1484_v31 = vld [vmem:[%s2230_s9] ss:$0 sm:$0xff] }
  0x5f   : > { %666 = vmatpush.msra.mxu0 %v628_v7  ;;  %1336 = vmatmul.msk.f32.vlgmr.msra.gmra.mxu1 %vm647_vm0, %v624_v8 }
  0x60   : > { %1335 = vmatmul.msk.f32.vlgmr.msra.gmra.mxu0 %vm647_vm0, %v623_v9  ;;  %720 = vmatpush.msra.mxu2 %v640_v17 }
  0x61   : > { %s1352_s13 = sshll.u32 %s2276_s18, 3 }
  0x62   : > { %721 = vmatpush.msra.mxu2 %v639_v18  ;;  %s1111_s17 = scalar_lea.hbm %s2277_s14, %s1352_s13  ;;  %s1762_s25 = scalar_lea.hbm %s2277_s14, 16 }
  0x64   : > { %722 = vmatpush.msra.mxu2 %v638_v19 }
  0x65   : > { %1337 = vmatmul.msk.f32.vlgmr.msra.gmra.mxu2 %vm647_vm0, %v625_v20 }
  0xdc   : > { %v696_v12 = vpop.f32.mrf.mxu1 }
  0xdd   : > { %v668_v13 = vpop.f32.mrf.mxu0  ;;  %v697_v14 = vadd.f32 %v1482_v10, %v696_v12 }
  0xde   : > { %v669_v15 = vadd.f32 %v1483_v11, %v668_v13 }
  0xdf   : > { %961 = vrot.lane.b32.xlu2 %v697_v14, %s1852_s4  ;;  %804 = vrot.lane.b32.xlu1 %v697_v14, %s1853_s30 }
  0xe0   : > { %883 = vrot.lane.b32.xlu0 %v697_v14, %s1854_s28  ;;  %1338 = vmatpush.xpose.msk.msra.mxu3 %vm728_vm1, %v697_v14 }
  0xe3   : > { %1339 = vmatmul.msk.f32.vlgmr.msra.gmra.mxu3 %vm728_vm1, %v669_v15 }
  0xe7   : > { %959 = vrot.lane.b32.xlu2 %v669_v15, %s1852_s4  ;;  %802 = vrot.lane.b32.xlu1 %v669_v15, %s1853_s30 }
  0xe8   : > { %881 = vrot.lane.b32.xlu0 %v669_v15, %s1854_s28  ;;  %v724_v32 = vpop.f32.mrf.mxu2 }
  0xe9   : > { %v725_v33 = vadd.f32 %v1484_v31, %v724_v32 }
  0xeb   : > { %796 = vmatpush.msrb.mxu3 %v725_v33 }
 0x139   : > { %v962_v22 = vpop.permute.xlu2 %961 }
 0x141   : > { %v960_v26 = vpop.permute.xlu2 %959 }
 0x151   : > { %v805_v21 = vpop.permute.xlu1 %804 }
 0x152   : > { %v884_v23 = vpop.permute.xlu0 %883  ;;  %1341 = vmatpush.xpose.msk.msrb.mxu0 %vm728_vm1, %v805_v21 }
 0x153   : > { %1344 = vmatpush.xpose.msk.msrb.mxu2 %vm728_vm1, %v884_v23 }
 0x156   : > { %1347 = vmatpush.xpose.msk.msra.mxu0 %vm728_vm1, %v962_v22 }
 0x159   : > { %v803_v24 = vpop.permute.xlu1 %802 }
 0x15a   : > { %v882_v25 = vpop.permute.xlu0 %881  ;;  %1342 = vmatmul.msk.f32.vlgmr.msrb.gmra.mxu0 %vm728_vm1, %v803_v24 }
 0x15b   : > { %1345 = vmatmul.msk.f32.vlgmr.msrb.gmra.mxu2 %vm728_vm1, %v882_v25 }
 0x162   : > { %1348 = vmatmul.msk.f32.vlgmr.msra.gmra.mxu0 %vm728_vm1, %v960_v26 }
 0x166   : > { %v752_v28 = vpop.f32.mrf.mxu3 }
 0x167   : > { %v753_v29 = vadd.f32 %v752_v28, %v727_v27 }
 0x169   : > { %v755_v30 = vsel %vm728_vm1, %v753_v29, -inf }
 0x16a   : > { %756 = vmax.xlane.f32.xlu0 %v755_v30 }
 0x17e   : > { %854 = vrot.lane.b32.xlu0 %v725_v33, %s1853_s30  ;;  %s1101_s30 = scalar_lea.sflag [#allocation5], %s2092_s8 }
 0x1d7   : > { %v827_v34 = vpop.f32.mrf.mxu0 }
 0x1d8   : > { %v828_v35 = vadd.f32 %v827_v34, %v727_v27 }
 0x1da   : > { %v830_v36 = vsel %vm728_vm1, %v828_v35, -inf }
 0x1db   : > { %831 = vmax.xlane.f32.xlu1 %v830_v36 }
 0x1dd   : > { %v757_v37 = vpop.xlane.xlu0 %756 }
 0x1de   : > { %v758_v38 = vsub.f32 %v753_v29, %v757_v37  ;;  %v906_v39 = vpop.f32.mrf.mxu2 }
 0x1df   : > { %v907_v40 = vadd.f32 %v906_v39, %v727_v27  ;;  %v984_v43 = vpop.f32.mrf.mxu0 }
 0x1e0   : > { %v759_v41 = vmul.f32 1.442695, %v758_v38  ;;  %v985_v44 = vadd.f32 %v984_v43, %v727_v27  ;;  %v1057_v43 = vld [vmem:[#allocation15 + $0x10] sm:$0xff] }
 0x1e1   : > { %v909_v42 = vsel %vm728_vm1, %v907_v40, -inf }
 0x1e2   : > { %1486 = vpow2.f32 %v759_v41  ;;  %910 = vmax.xlane.f32.xlu2 %v909_v42  ;;  %v987_v46 = vsel %vm728_vm1, %v985_v44, -inf  ;;  %v1058_v42 = vld [vmem:[#allocation15 + $0x18] sm:$0xff] }
 0x1e3   : > { %1074 = vmatpush.msra.mxu2 %v1058_v42 }
 0x1e5   : > { %1075 = vmatpush.msra.mxu2 %v1057_v43 }
 0x1e8   : > { %v1487_v45 = vpop.eup %1486 }
 0x1e9   : > { %1340 = vmatmul.msk.f32.vlgmr.msrb.gmra.mxu3 %vm728_vm1, %v1487_v45  ;;  %v761_v61 = vsel %vm728_vm1, %v1487_v45, 0.0 }
 0x1ea   : > { %988 = vmax.xlane.f32.xlu2 %v987_v46  ;;  %v1055_v46 = vld [vmem:[#allocation15] sm:$0xff] }
 0x1f0   : > { %v855_v47 = vpop.permute.xlu0 %854 }
 0x1f1   : > { %875 = vmatpush.msrb.mxu1 %v855_v47 }
 0x1f4   : > { %932 = vrot.lane.b32.xlu1 %v725_v33, %s1854_s28 }
 0x202   : > { %1010 = vrot.lane.b32.xlu2 %v725_v33, %s1852_s4  ;;  %s1115_s4 = sshll.u32 %s1111_s17, 4  ;;  %s1116_s4 = int_to_ptr.hbm [resolvable:$true] %s1115_s4 }
 0x203   : > { %s1756_s28 = sshra.s32 %s1116_s4, 4  ;;  %s1757_s28 = int_to_ptr.hbm [resolvable:$true] %s1756_s28 }
 0x204   : > { %s1758_s21 = scalar_lea.hbm %s1757_s28, 8  ;;  %p1763_p8 = scmp.lt.s32.totalorder %s1757_s28, %s2277_s14 }
 0x205   : > { %p1759_p1 = scmp.ne.s32.totalorder %s1757_s28, %s1758_s21  ;;  %p1764_p10 = scmp.lt.s32.totalorder %s1762_s25, %s1758_s21 }
 0x207   : > { %p1760_p2 = pnand %p1759_p1, %p2013_p7  ;;  %p1765_p13 = por %p1764_p10, %p1763_p8 }
 0x209   : > { %p1761_p4 = pneg %p1760_p2 }
 0x20b   : > { %p1766_p0 = pnand %p1765_p13, %p1761_p4 }
 0x24e   : > { %v832_v48 = vpop.xlane.xlu1 %831 }
 0x24f   : > { %v833_v49 = vsub.f32 %v828_v35, %v832_v48 }
 0x251   : > { %v834_v50 = vmul.f32 1.442695, %v833_v49 }
 0x253   : > { %1488 = vpow2.f32 %v834_v50 }
 0x255   : > { %v911_v51 = vpop.xlane.xlu2 %910 }
 0x256   : > { %v912_v52 = vsub.f32 %v907_v40, %v911_v51 }
 0x258   : > { %v913_v53 = vmul.f32 1.442695, %v912_v52 }
 0x259   : > { %v1489_v54 = vpop.eup %1488 }
 0x25a   : > { %1490 = vpow2.f32 %v913_v53  ;;  %1343 = vmatmul.msk.f32.vlgmr.msrb.gmra.mxu1 %vm728_vm1, %v1489_v54  ;;  %v836_v55 = vsel %vm728_vm1, %v1489_v54, 0.0 }
 0x25b   : > { %837 = vadd.xlane.f32.xlu0 %v836_v55 }
 0x25d   : > { %v989_v56 = vpop.xlane.xlu2 %988 }
 0x25e   : > { %v990_v57 = vsub.f32 %v985_v44, %v989_v56  ;;  %v1056_v44 = vld [vmem:[#allocation15 + $0x8] sm:$0xff] }
 0x25f   : > { %1076 = vmatpush.msra.mxu2 %v1056_v44 }
 0x260   : > { %v1491_v58 = vpop.eup %1490  ;;  %v991_v59 = vmul.f32 1.442695, %v990_v57 }
 0x261   : > { %v915_v60 = vsel %vm728_vm1, %v1491_v58, 0.0  ;;  %1077 = vmatpush.msra.mxu2 %v1055_v46 }
 0x262   : > { %1492 = vpow2.f32 %v991_v59  ;;  %916 = vadd.xlane.f32.xlu1 %v915_v60 }
 0x263   : > { %762 = vadd.xlane.f32.xlu0 %v761_v61 }
 0x265   : > { %v1011_v62 = vpop.permute.xlu2 %1010 }
 0x266   : > { %1031 = vmatpush.msra.mxu1 %v1011_v62  ;;  %v933_v63 = vpop.permute.xlu1 %932 }
 0x267   : > { %953 = vmatpush.msra.mxu3 %v933_v63 }
 0x268   : > { %v1493_v0 = vpop.eup %1492  ;;  %1346 = vmatmul.msk.f32.vlgmr.msra.gmra.mxu3 %vm728_vm1, %v1491_v58 }
 0x269   : > { %1349 = vmatmul.msk.f32.vlgmr.msra.gmra.mxu1 %vm728_vm1, %v1493_v0  ;;  %v993_v1 = vsel %vm728_vm1, %v1493_v0, 0.0  ;;  %v1858_v0 = vmov 0.0  }
 0x26a   : > { %994 = vadd.xlane.f32.xlu2 %v993_v1  ;;  %1086 = vst.msk [vmem:[#allocation2] sm:$0xff] %vm647_vm0, %v1858_v0 }
 0x26c   : > { %v798_v21 = vpop.f32.mrf.mxu3 }
 0x271   : > { %v1087_v1 = vld [vmem:[#allocation2] sm:$0xff] }
 0x2ce   : > { %v838_v2 = vpop.xlane.xlu0 %837 }
 0x2cf   : > { %1494 = vrcp.f32 %v838_v2  ;;  %v850_v7 = vand.u32 2147483648, %v838_v2  ;;  %v848_v9 = vand.u32 2147483647, %v838_v2  ;;  %vm844_vm3 = vweird.f32 %v838_v2 }
 0x2d1   : > { %v851_v13 = vor.u32 1.1754944e-38, %v850_v7  ;;  %vm849_vm5 = vcmp.eq.f32.partialorder %v848_v9, 8.507059e+37 }
 0x2d5   : > { %v1495_v3 = vpop.eup %1494  ;;  %v917_v4 = vpop.xlane.xlu1 %916 }
 0x2d6   : > { %v840_v5 = vmul.f32 %v1495_v3, %v838_v2  ;;  %1496 = vrcp.f32 %v917_v4  ;;  %vm845_vm2 = vweird.f32 %v1495_v3  ;;  %v929_v25 = vand.u32 2147483648, %v917_v4  ;;  %v763_v45 = vpop.xlane.xlu0 %762 }
 0x2d7   : > { %vm846_vm4 = vmor %vm844_vm3, %vm845_vm2  ;;  %v877_v18 = vpop.f32.mrf.mxu1  ;;  %vm923_vm7 = vweird.f32 %v917_v4  ;;  %v927_v26 = vand.u32 2147483647, %v917_v4  ;;  %v775_v52 = vand.u32 2147483648, %v763_v45  ;;  %vm769_vm15 = vweird.f32 %v763_v45 }
 0x2d8   : > { %v841_v6 = vsub.f32 1.0, %v840_v5  ;;  %v930_v32 = vor.u32 1.1754944e-38, %v929_v25  ;;  %v773_v53 = vand.u32 2147483647, %v763_v45 }
 0x2d9   : > { %vm928_vm10 = vcmp.eq.f32.partialorder %v927_v26, 8.507059e+37  ;;  %v776_v55 = vor.u32 1.1754944e-38, %v775_v52 }
 0x2da   : > { %v842_v8 = vmul.f32 %v1495_v3, %v841_v6  ;;  %vm774_vm3 = vcmp.eq.f32.partialorder %v773_v53, 8.507059e+37 }
 0x2dc   : > { %v1497_v10 = vpop.eup %1496  ;;  %v843_v11 = vadd.f32 %v1495_v3, %v842_v8 }
 0x2dd   : > { %v919_v12 = vmul.f32 %v1497_v10, %v917_v4  ;;  %v995_v14 = vpop.xlane.xlu2 %994  ;;  %vm924_vm6 = vweird.f32 %v1497_v10  ;;  %v1485_v4 = vld [vmem:[%s2279_s29] ss:$0 sm:$0xff] }
 0x2de   : > { %v847_v15 = vsel %vm846_vm4, %v1495_v3, %v843_v11  ;;  %1498 = vrcp.f32 %v995_v14  ;;  %vm925_vm8 = vmor %vm923_vm7, %vm924_vm6  ;;  %v1007_v28 = vand.u32 2147483648, %v995_v14  ;;  %v1005_v31 = vand.u32 2147483647, %v995_v14 }
 0x2df   : > { %v920_v16 = vsub.f32 1.0, %v919_v12  ;;  %v852_v17 = vsel %vm849_vm5, %v851_v13, %v847_v15  ;;  %vm1001_vm11 = vweird.f32 %v995_v14  ;;  %1500 = vrcp.f32 %v763_v45 }
 0x2e0   : > { %v880_v19 = vmul.f32 %v877_v18, %v852_v17  ;;  %v1008_v36 = vor.u32 1.1754944e-38, %v1007_v28  ;;  %vm1006_vm13 = vcmp.eq.f32.partialorder %v1005_v31, 8.507059e+37  ;;  %vm1050_vm4 = vcmask 130048  }
 0x2e1   : > { %v921_v20 = vmul.f32 %v1497_v10, %v920_v16  ;;  %vm1052_vm5 = vcmask 195584  }
 0x2e2   : > { %1038 = vrot.lane.b32.xlu1 %v880_v19, %s1855_s11 }
 0x2e3   : > { %v922_v23 = vadd.f32 %v1497_v10, %v921_v20 }
 0x2e4   : > { %v1499_v22 = vpop.eup %1498 }
 0x2e5   : > { %v997_v24 = vmul.f32 %v1499_v22, %v995_v14  ;;  %v926_v29 = vsel %vm925_vm8, %v1497_v10, %v922_v23  ;;  %vm1002_vm9 = vweird.f32 %v1499_v22  ;;  %v1501_v47 = vpop.eup %1500 }
 0x2e6   : > { %v931_v34 = vsel %vm928_vm10, %v930_v32, %v926_v29  ;;  %vm1003_vm12 = vmor %vm1001_vm11, %vm1002_vm9  ;;  %v1033_v40 = vpop.f32.mrf.mxu1  ;;  %v765_v48 = vmul.f32 %v1501_v47, %v763_v45  ;;  %vm770_vm14 = vweird.f32 %v1501_v47 }
 0x2e7   : > { %v998_v27 = vsub.f32 1.0, %v997_v24  ;;  %vm771_vm2 = vmor %vm769_vm15, %vm770_vm14 }
 0x2e8   : > { %v766_v49 = vsub.f32 1.0, %v765_v48 }
 0x2e9   : > { %v999_v30 = vmul.f32 %v1499_v22, %v998_v27 }
 0x2ea   : > { %v767_v50 = vmul.f32 %v1501_v47, %v766_v49 }
 0x2eb   : > { %v1000_v33 = vadd.f32 %v1499_v22, %v999_v30  ;;  %v955_v35 = vpop.f32.mrf.mxu3 }
 0x2ec   : > { %v958_v37 = vmul.f32 %v955_v35, %v931_v34  ;;  %v768_v51 = vadd.f32 %v1501_v47, %v767_v50 }
 0x2ed   : > { %v1004_v38 = vsel %vm1003_vm12, %v1499_v22, %v1000_v33 }
 0x2ee   : > { %v1009_v39 = vsel %vm1006_vm13, %v1008_v36, %v1004_v38  ;;  %1042 = vrot.lane.b32.xlu0 %v958_v37, %s1856_s15  ;;  %v772_v54 = vsel %vm771_vm2, %v1501_v47, %v768_v51 }
 0x2ef   : > { %v1036_v41 = vmul.f32 %v1033_v40, %v1009_v39  ;;  %v777_v56 = vsel %vm774_vm3, %v776_v55, %v772_v54 }
 0x2f0   : > { %v801_v58 = vmul.f32 %v798_v21, %v777_v56 }
 0x2f1   : > { %1046 = vrot.lane.b32.xlu2 %v1036_v41, %s1857_s12 }
 0x34b   : > { %v1047_v61 = vpop.permute.xlu2 %1046 }
 0x354   : > { %v1039_v57 = vpop.permute.xlu1 %1038 }
 0x355   : > { %v1049_v59 = vsel %vm728_vm1, %v801_v58, %v1039_v57 }
 0x360   : > { %v1043_v60 = vpop.permute.xlu0 %1042 }
 0x361   : > { %v1051_v62 = vsel %vm1050_vm4, %v1049_v59, %v1043_v60 }
 0x362   : > { %v1053_v63 = vsel %vm1052_vm5, %v1051_v62, %v1047_v61 }
 0x363   : > { %1350 = vmatmul.msk.f32.vlgmr.msra.gmra.mxu2 %vm647_vm0, %v1053_v63 }
 0x3e6   : > { %v1079_v2 = vpop.f32.mrf.mxu2 }
 0x3e7   : > { %v1088_v3 = vadd.f32 %v1087_v1, %v1079_v2 }
 0x3e9   : > { %1089 = vst.msk [vmem:[#allocation2] sm:$0xff] %vm647_vm0, %v1088_v3 }
 0x3f0   : > { %v1093_v5 = vld [vmem:[#allocation2] sm:$0xff] }
 0x3f1   : > { %v1098_v6 = vadd.f32 %v1485_v4, %v1093_v5 }
 0x3f3   : > { %1099 = vst.msk [vmem:[%s622_s6] sm:$0xff] %vm647_vm0, %v1098_v6 }
 0x3f4   : > { %1769 = shalt.err (!%p1766_p0)
}
 0x3f5   : > { %1379 = dma.vmem_to_hbm [thread:$0]  (%p2013_p7), %s1114_s24, 128, %s1116_s4, %s1101_s30  }
 0x3f6 PF: > { %s2280_s8 = sld [smem:[#allocation25_spill]]  ;;  %p1408_p3 = pnand %p1316_p11, %p1969_p6 }
 0x3f8   : > { %p1409_p5 = pneg %p1408_p3 }
 0x3fc   : > { %s1127_s13 = sand.u32 1, %s2280_s8  }
 0x3fd   : > { %s1128_s0 = scalar_lea.sflag [#allocation5], %s1127_s13 }
 0x3fe   : > { %1819 = dma.done.wait (%p1409_p5), %s1128_s0, 128  }
 0x3ff   : > { %1821 = vsyncadd (%p1409_p5), %s1128_s0, 4294967168  ;;  %s36_s26 = sadd.s32 1, %s1844_s26   ;;  %s2282_s16 = sld [smem:[#allocation31_spill]] }
 0x400   : > { %p33_p9 = scmp.ge.s32.totalorder %s36_s26, 4   ;;  %s2283_s24 = sld [smem:[#allocation27_spill]] }
 0x401   : > { %s2284_s25 = sld [smem:[#allocation29_spill]]  ;;  %s2285_s21 = smov %s1828_s22 }
 0x402   : > { %s2286_s22 = smov %s1832_s23  ;;  %35 = sbr.rel (!%p33_p9) target bundleno = 20 (0x14), region = 181 }
 0x405   : > { %s2287_s23 = smov %s2282_s16 }
 0x407   :  { %1134 = vsyncpa [#allocation4], 1 }
 0x408   :  { %1136 = vsyncpa [#allocation4 + $0x1], 1 }
 0x409   :  { %1137 = vsyncpa [#allocation7], 1 }
 0x40a   :  { %1139 = vsyncpa [#allocation7 + $0x1], 1 }
 0x40b   :  { %1140 = vsyncpa [#allocation10], 1 }
 0x40c   :  { %1142 = vsyncpa [#allocation10 + $0x1], 1 }
 0x40d   :  { %1143 = vsyncpa [#allocation13], 1 }
 0x40e   :  { %1144 = vsyncpa [#allocation16], 1 }
 0x40f   :  { %1145 = vsyncpa [#allocation5], 1 }
 0x410   :  { %1147 = vsyncpa [#allocation5 + $0x1], 1 }

</bundles_post_ra>
